<compile_context>
chip_gen: v6e
topology: v6e:2x2x1
jax: 0.10.0
libtpu: 0.0.40
codegen_flags: <defaults>
</compile_context>

<pallas_src>
import functools

import jax
import jax.numpy as jnp
from jax.experimental import pallas as pl
from jax.experimental.pallas import tpu as pltpu


def _round_up(v, m):
    return (v + m - 1) // m * m


def snn_layer_kernel(x_ref, pt_ref, psq_ref, bias_ref, labels_ref, out_ref,
                     *, neg_inv_tau):
    """Fused cdist -> softmax -> votes@labels for one (tm, E) row tile."""
    x = x_ref[...]          # (tm, E) f32
    pt = pt_ref[...]        # (E, P)  f32  -- protos already transposed in wrapper
    psq = psq_ref[...]      # (1, P)  f32  -- precomputed ||proto||^2
    bias = bias_ref[...]    # (1, P)  f32  -- 0 for valid protos, -1e30 for padding
    lab = labels_ref[...]   # (P, C)  f32  -- zero-padded labels

    # Pairwise Euclidean distance via ||x||^2 + ||p||^2 - 2 x.p (MXU matmul,
    # no in-kernel transpose: protos come in as (E, P)).
    x_sq = jnp.sum(x * x, axis=1, keepdims=True)                    # (tm, 1)
    cross = jnp.dot(x, pt, preferred_element_type=jnp.float32)      # (tm, P)
    d2 = jnp.maximum(x_sq + psq - 2.0 * cross, 0.0)
    dist = jnp.sqrt(d2)                                             # (tm, P)

    # softmax(-dist/tau) along the proto axis; padded protos masked out by bias.
    logits = dist * neg_inv_tau + bias
    m = jnp.max(logits, axis=1, keepdims=True)
    e = jnp.exp(logits - m)
    denom = jnp.sum(e, axis=1, keepdims=True)
    votes = e * pl.reciprocal(denom, approx=True)                   # (tm, P)

    # votes @ labels -> (tm, C); padded label rows are zero so they contribute 0.
    out_ref[...] = jnp.dot(votes, lab, preferred_element_type=jnp.float32)


def snn_layer_forward(x, protos, labels, tau=100.0, *, block_rows=512):
    n, emb = x.shape
    n_protos, emb_p = protos.shape
    assert emb == emb_p
    _, n_classes = labels.shape

    # Lane-friendly padding of proto / class axes.
    p_pad = _round_up(max(n_protos, 128), 128)   # 60  -> 128
    c_pad = _round_up(max(n_classes, 128), 128)  # 10  -> 128

    # Row tile: one block for small batches, block_rows for large ones.
    tm = _round_up(n, 8) if n <= block_rows else block_rows
    n_pad = _round_up(n, tm)
    grid = (n_pad // tm,)

    xf = x.astype(jnp.float32)
    x_p = jnp.zeros((n_pad, emb), jnp.float32).at[:n].set(xf)

    protos_f = protos.astype(jnp.float32)
    protos_pad = jnp.zeros((p_pad, emb), jnp.float32).at[:n_protos].set(protos_f)
    protos_t = protos_pad.T                                        # (E, P), hoisted
    psq = jnp.sum(protos_pad * protos_pad, axis=1)[None, :]        # (1, P), hoisted
    bias = jnp.where(jnp.arange(p_pad)[None, :] < n_protos,
                     0.0, -1e30).astype(jnp.float32)               # (1, P)

    labels_pad = jnp.zeros((p_pad, c_pad), jnp.float32)
    labels_pad = labels_pad.at[:n_protos, :n_classes].set(labels.astype(jnp.float32))

    kernel = functools.partial(snn_layer_kernel, neg_inv_tau=-1.0 / float(tau))

    out_pad = pl.pallas_call(
        kernel,
        out_shape=jax.ShapeDtypeStruct((n_pad, c_pad), jnp.float32),
        grid_spec=pltpu.PrefetchScalarGridSpec(
            num_scalar_prefetch=0,
            grid=grid,
            in_specs=[
                pl.BlockSpec((tm, emb), lambda i: (i, 0)),       # x row tile
                pl.BlockSpec((emb, p_pad), lambda i: (0, 0)),    # protos^T (broadcast)
                pl.BlockSpec((1, p_pad), lambda i: (0, 0)),      # ||proto||^2
                pl.BlockSpec((1, p_pad), lambda i: (0, 0)),      # pad-mask bias
                pl.BlockSpec((p_pad, c_pad), lambda i: (0, 0)),  # labels
            ],
            out_specs=pl.BlockSpec((tm, c_pad), lambda i: (i, 0)),
        ),
        compiler_params=pltpu.CompilerParams(
            dimension_semantics=("parallel",)),
    )(x_p, protos_t, psq, bias, labels_pad)

    return out_pad[:n, :n_classes]


def make_params(emb_len, n_classes, n_protos=60, smooth=0.1, key=None):
    """Deterministic parameter init matching SnnLayer.__init__."""
    if key is None:
        key = jax.random.PRNGKey(0)
    protos = jax.random.uniform(key, (n_protos, emb_len), dtype=jnp.float32)
    offset = smooth / n_classes
    base_i = jnp.arange(n_protos)
    base_votes = jnp.full((n_protos, n_classes), offset, dtype=jnp.float32)
    base_votes = base_votes.at[base_i, base_i % n_classes].add(1.0 - offset)
    labels = base_votes * 100.0
    return protos, labels


def reference_forward(x, protos, labels, tau=100.0):
    """Plain-JAX reference for sanity checking."""
    dist = jnp.sqrt(
        jnp.maximum(
            jnp.sum(x * x, 1, keepdims=True)
            + jnp.sum(protos * protos, 1)[None, :]
            - 2.0 * (x @ protos.T),
            0.0,
        )
    )
    votes = jax.nn.softmax(-dist / tau, axis=1)
    return votes @ labels


if __name__ == "__main__":
    emb_len, n_classes, n_protos, tau = 32, 10, 60, 100.0

    key = jax.random.PRNGKey(0)
    k_x1, k_x2, k_p = jax.random.split(key, 3)

    protos, labels = make_params(emb_len, n_classes, n_protos, smooth=0.1, key=k_p)

    # Small, latency-bound case (single grid step).
    x_small = jax.random.normal(k_x1, (8, emb_len), dtype=jnp.float32)
    out_small = jax.block_until_ready(snn_layer_forward(x_small, protos, labels, tau))
    ref_small = reference_forward(x_small, protos, labels, tau)
    assert out_small.shape == (8, n_classes)
    assert jnp.allclose(out_small, ref_small, atol=2e-3, rtol=2e-3)

    # Larger batch: exercises the tiled grid (tm=512, 2 steps) and row padding.
    x_big = jax.random.normal(k_x2, (1000, emb_len), dtype=jnp.float32)
    out_big = jax.block_until_ready(snn_layer_forward(x_big, protos, labels, tau))
    ref_big = reference_forward(x_big, protos, labels, tau)
    assert out_big.shape == (1000, n_classes)
    assert jnp.allclose(out_big, ref_big, atol=2e-3, rtol=2e-3)

    print("KERNEL_OK")
</pallas_src>

<mosaic_0001>
module attributes {stable_mosaic.version = 11 : i64} {
  func.func @snn_layer_kernel(%arg0: i32, %arg1: memref<8x32xf32, #tpu.memory_space<vmem>>, %arg2: memref<32x128xf32, #tpu.memory_space<vmem>>, %arg3: memref<1x128xf32, #tpu.memory_space<vmem>>, %arg4: memref<1x128xf32, #tpu.memory_space<vmem>>, %arg5: memref<128x128xf32, #tpu.memory_space<vmem>>, %arg6: memref<8x128xf32, #tpu.memory_space<vmem>>) attributes {dimension_semantics = [#tpu.dimension_semantics<parallel>], iteration_bounds = array<i64: 1>, scalar_prefetch = 0 : i64, scratch_operands = 0 : i64, tpu.core_type = #tpu.core_type<tc>, window_params = [{transform_indices = @transform_0, window_bounds = array<i64: 8, 32>}, {pipeline_mode = #tpu.pipeline_mode<synchronous>, transform_indices = @transform_1, window_bounds = array<i64: 32, 128>}, {pipeline_mode = #tpu.pipeline_mode<synchronous>, transform_indices = @transform_2, window_bounds = array<i64: 1, 128>}, {pipeline_mode = #tpu.pipeline_mode<synchronous>, transform_indices = @transform_3, window_bounds = array<i64: 1, 128>}, {pipeline_mode = #tpu.pipeline_mode<synchronous>, transform_indices = @transform_4, window_bounds = array<i64: 128, 128>}, {transform_indices = @transform_5, window_bounds = array<i64: 8, 128>}]} {
    %c0 = arith.constant 0 : index
    %c0_0 = arith.constant 0 : index
    %0 = vector.load %arg1[%c0, %c0_0] : memref<8x32xf32, #tpu.memory_space<vmem>>, vector<8x32xf32>
    %c0_1 = arith.constant 0 : index
    %c0_2 = arith.constant 0 : index
    %1 = vector.load %arg2[%c0_1, %c0_2] : memref<32x128xf32, #tpu.memory_space<vmem>>, vector<32x128xf32>
    %c0_3 = arith.constant 0 : index
    %c0_4 = arith.constant 0 : index
    %2 = vector.load %arg3[%c0_3, %c0_4] : memref<1x128xf32, #tpu.memory_space<vmem>>, vector<1x128xf32>
    %c0_5 = arith.constant 0 : index
    %c0_6 = arith.constant 0 : index
    %3 = vector.load %arg4[%c0_5, %c0_6] : memref<1x128xf32, #tpu.memory_space<vmem>>, vector<1x128xf32>
    %c0_7 = arith.constant 0 : index
    %c0_8 = arith.constant 0 : index
    %4 = vector.load %arg5[%c0_7, %c0_8] : memref<128x128xf32, #tpu.memory_space<vmem>>, vector<128x128xf32>
    %5 = arith.mulf %0, %0 : vector<8x32xf32>
    %cst = arith.constant dense<0.000000e+00> : vector<8xf32>
    %6 = vector.multi_reduction <add>, %5, %cst [1] : vector<8x32xf32> to vector<8xf32>
    %7 = vector.shape_cast %6 : vector<8xf32> to vector<8x1xf32>
    %cst_9 = arith.constant dense<0.000000e+00> : vector<8x128xf32>
    %8 = tpu.matmul %0, %1, %cst_9 {dimension_numbers = #tpu.dot_dimension_numbers<[1], [0], [0], [1], [0, 0, 1, 1], [], []>} : vector<8x32xf32>, vector<32x128xf32>, vector<8x128xf32> -> vector<8x128xf32>
    %9 = vector.broadcast %7 : vector<8x1xf32> to vector<8x128xf32>
    %10 = vector.broadcast %2 : vector<1x128xf32> to vector<8x128xf32>
    %11 = arith.addf %9, %10 : vector<8x128xf32>
    %cst_10 = arith.constant 2.000000e+00 : f32
    %12 = vector.broadcast %cst_10 : f32 to vector<8x128xf32>
    %13 = arith.mulf %12, %8 : vector<8x128xf32>
    %14 = arith.subf %11, %13 : vector<8x128xf32>
    %cst_11 = arith.constant 0.000000e+00 : f32
    %15 = vector.broadcast %cst_11 : f32 to vector<8x128xf32>
    %16 = arith.maximumf %14, %15 : vector<8x128xf32>
    %17 = math.sqrt %16 : vector<8x128xf32>
    %cst_12 = arith.constant -0.00999999977 : f32
    %18 = vector.broadcast %cst_12 : f32 to vector<8x128xf32>
    %19 = arith.mulf %17, %18 : vector<8x128xf32>
    %20 = vector.broadcast %3 : vector<1x128xf32> to vector<8x128xf32>
    %21 = arith.addf %19, %20 : vector<8x128xf32>
    %cst_13 = arith.constant dense<0xFF800000> : vector<8xf32>
    %22 = vector.multi_reduction <maximumf>, %21, %cst_13 [1] : vector<8x128xf32> to vector<8xf32>
    %23 = vector.shape_cast %22 : vector<8xf32> to vector<8x1xf32>
    %24 = vector.broadcast %23 : vector<8x1xf32> to vector<8x128xf32>
    %25 = arith.subf %21, %24 : vector<8x128xf32>
    %26 = math.exp %25 : vector<8x128xf32>
    %cst_14 = arith.constant dense<0.000000e+00> : vector<8xf32>
    %27 = vector.multi_reduction <add>, %26, %cst_14 [1] : vector<8x128xf32> to vector<8xf32>
    %28 = vector.shape_cast %27 : vector<8xf32> to vector<8x1xf32>
    %29 = tpu.reciprocal %28 {approx = true} : vector<8x1xf32> -> vector<8x1xf32>
    %30 = vector.broadcast %29 : vector<8x1xf32> to vector<8x128xf32>
    %31 = arith.mulf %26, %30 : vector<8x128xf32>
    %cst_15 = arith.constant dense<0.000000e+00> : vector<8x128xf32>
    %32 = tpu.matmul %31, %4, %cst_15 {dimension_numbers = #tpu.dot_dimension_numbers<[1], [0], [0], [1], [0, 0, 1, 1], [], []>} : vector<8x128xf32>, vector<128x128xf32>, vector<8x128xf32> -> vector<8x128xf32>
    %c0_16 = arith.constant 0 : index
    %c0_17 = arith.constant 0 : index
    %33 = vector.load %arg6[%c0_16, %c0_17] : memref<8x128xf32, #tpu.memory_space<vmem>>, vector<8x128xf32>
    tpu.vector_store %arg6[%c0_16, %c0_17], %32 {strides = array<i32>} : memref<8x128xf32, #tpu.memory_space<vmem>>, vector<8x128xf32>,
    return
  }
  func.func @transform_0(%arg0: i32) -> (i32, i32) {
    %c0_i32 = arith.constant 0 : i32
    %c0_i32_0 = arith.constant 0 : i32
    return %arg0, %c0_i32 : i32, i32
  }
  func.func @transform_1(%arg0: i32) -> (i32, i32) {
    %c0_i32 = arith.constant 0 : i32
    %c0_i32_0 = arith.constant 0 : i32
    %c0_i32_1 = arith.constant 0 : i32
    return %c0_i32, %c0_i32_0 : i32, i32
  }
  func.func @transform_2(%arg0: i32) -> (i32, i32) {
    %c0_i32 = arith.constant 0 : i32
    %c0_i32_0 = arith.constant 0 : i32
    %c0_i32_1 = arith.constant 0 : i32
    return %c0_i32, %c0_i32_0 : i32, i32
  }
  func.func @transform_3(%arg0: i32) -> (i32, i32) {
    %c0_i32 = arith.constant 0 : i32
    %c0_i32_0 = arith.constant 0 : i32
    %c0_i32_1 = arith.constant 0 : i32
    return %c0_i32, %c0_i32_0 : i32, i32
  }
  func.func @transform_4(%arg0: i32) -> (i32, i32) {
    %c0_i32 = arith.constant 0 : i32
    %c0_i32_0 = arith.constant 0 : i32
    %c0_i32_1 = arith.constant 0 : i32
    return %c0_i32, %c0_i32_0 : i32, i32
  }
  func.func @transform_5(%arg0: i32) -> (i32, i32) {
    %c0_i32 = arith.constant 0 : i32
    %c0_i32_0 = arith.constant 0 : i32
    return %arg0, %c0_i32 : i32, i32
  }
}

</mosaic_0001>

<bundles_post_ra>
// kernel: tpu_custom_call.1
= control target key start
LH: loop header
LB: loop body
LE: loop exit
PB: predicated region body
PF: predicated region fallthrough
CT: control target
= control target key end

     0   :  { %10 = vsyncpa [#allocation3], 0  ;;  %s531_s0 = inlined_call_operand.hbm [shape: f32[8,32], index: 0, kind: input, shape index: {}]   ;;  %s532_s1 = inlined_call_operand.hbm [shape: f32[32,128], index: 1, kind: input, shape index: {}]   ;;  %s533_s2 = inlined_call_operand.vmem [shape: f32[1,128], index: 2, kind: input, shape index: {}]   ;;  %s534_s3 = inlined_call_operand.vmem [shape: f32[1,128], index: 3, kind: input, shape index: {}]   ;;  %s535_s4 = inlined_call_operand.hbm [shape: f32[128,128], index: 4, kind: input, shape index: {}]   ;;  %s536_s5 = inlined_call_operand.hbm [shape: f32[8,128], index: 5, kind: output, shape index: {}]  }
   0x1   :  { %11 = vsyncpa [#allocation6], 0 }
   0x2   :  { %12 = vsyncpa [#allocation4], 0  ;;  %s453_s18 = smov [#allocation5]  }
   0x3   :  { %s28_s19 = sshll.u32 %s453_s18, 4  ;;  %s29_s19 = int_to_ptr.vmem [resolvable:$true] %s28_s19 }
   0x4   :  { %s375_s20 = scalar_lea.vmem %s29_s19, 512  ;;  %p380_p1 = scmp.lt.s32.totalorder %s29_s19, %s29_s19 }
   0x5   :  { %p376_p0 = scmp.ne.s32.totalorder %s29_s19, %s375_s20  ;;  %p381_p2 = scmp.lt.s32.totalorder %s375_s20, %s375_s20 }
   0x7   :  { %p382_p3 = por %p381_p2, %p380_p1 }
   0x9   :  { %p383_p4 = pnand %p382_p3, %p376_p0 }
   0xb   :  { %386 = shalt.err (!%p383_p4)
}
   0xc   :  { %s454_s21 = smov 128   ;;  %s455_s22 = smov 8  }
   0xd   :  { %34 = dma.hbm_to_vmem [thread:$0]  %s532_s1, 512, %s29_s19, [#allocation6], %s454_s21, %s454_s21, %s455_s22  }
   0xe   :  { %s456_s25 = smov [#allocation2]   ;;  %s457_s27 = smov [#allocation7]  }
   0xf   :  { %s19_s26 = sshll.u32 %s456_s25, 4  ;;  %s44_s28 = sshll.u32 %s457_s27, 4  ;;  %s20_s26 = int_to_ptr.vmem [resolvable:$true] %s19_s26  ;;  %s45_s28 = int_to_ptr.vmem [resolvable:$true] %s44_s28 }
  0x10   :  { %s395_s29 = scalar_lea.vmem %s20_s26, 128  ;;  %p400_p6 = scmp.lt.s32.totalorder %s20_s26, %s20_s26 }
  0x11   :  { %p396_p5 = scmp.ne.s32.totalorder %s20_s26, %s395_s29  ;;  %p401_p7 = scmp.lt.s32.totalorder %s395_s29, %s395_s29 }
  0x13   :  { %p402_p8 = por %p401_p7, %p400_p6 }
  0x15   :  { %p403_p9 = pnand %p402_p8, %p396_p5 }
  0x17   :  { %406 = shalt.err (!%p403_p9)
}
  0x18   :  { %22 = dma.hbm_to_vmem [thread:$0]  %s531_s0, 128, %s20_s26, [#allocation3]  }
  0x19   :  { %s415_s7 = scalar_lea.vmem %s45_s28, 2048  ;;  %p420_p11 = scmp.lt.s32.totalorder %s45_s28, %s45_s28 }
  0x1a   :  { %p416_p10 = scmp.ne.s32.totalorder %s45_s28, %s415_s7  ;;  %p421_p12 = scmp.lt.s32.totalorder %s415_s7, %s415_s7 }
  0x1c   :  { %p422_p13 = por %p421_p12, %p420_p11 }
  0x1e   :  { %p423_p0 = pnand %p422_p13, %p416_p10 }
  0x20   :  { %426 = shalt.err (!%p423_p0)
}
  0x21   :  { %50 = dma.hbm_to_vmem [thread:$0]  %s535_s4, 2048, %s45_s28, [#allocation6], %s454_s21, %s454_s21, %s455_s22  }
  0x22   :  { %447 = dma.done.wait [#allocation3], 128  }
  0x23   :  { %448 = vsyncadd [#allocation3], 4294967168 }
  0x24   :  { %449 = dma.done.wait [#allocation6], 2560  }
  0x25   :  { %450 = vsyncadd [#allocation6], 4294964736  ;;  %v458_v0 = vmov 0.0   ;;  %vm459_vm0 = vmmov 0   ;;  %v64_v1 = vld [vmem:[#allocation5 + $0x18] sm:$0xff]  ;;  %v63_v2 = vld [vmem:[#allocation5 + $0x10] sm:$0xff] }
  0x26   :  { %307 = vmatprep.subr.mxu0 %v458_v0  ;;  %315 = vmatprep.mubr.msk.f32.mxu0 %vm459_vm0, %v458_v0  ;;  %v60_v3 = vld [vmem:[#allocation2] sm:$0xff]  ;;  %v62_v4 = vld [vmem:[#allocation5 + $0x8] sm:$0xff]  ;;  %vm84_vm1 = vcmask 261120   ;;  %v61_v6 = vld [vmem:[#allocation5] sm:$0xff] }
  0x27   :  { %318 = vmatprep.subr.mxu1 %v458_v0  ;;  %350 = vmatprep.mubr.msk.f32.mxu1 %vm459_vm0, %v458_v0  ;;  %v83_v5 = vmul.f32 %v60_v3, %v60_v3  ;;  %v283_v8 = vld [vmem:[%s533_s2] ss:$0 sm:$0xff]  ;;  %v81_v25 = vld [vmem:[#allocation7 + $0x70] sm:$0xff]  ;;  %v80_v26 = vld [vmem:[#allocation7 + $0x68] sm:$0xff]  ;;  %s460_s2 = smov [#allocation8]  }
  0x28   :  { %308 = vmatpush3.msra.mxu0 %v64_v1  ;;  %v284_v20 = vld [vmem:[%s534_s3] ss:$0 sm:$0xff]  ;;  %v79_v27 = vld [vmem:[#allocation7 + $0x60] sm:$0xff]  ;;  %v77_v29 = vld [vmem:[#allocation7 + $0x50] sm:$0xff]  ;;  %s272_s3 = sshll.u32 %s460_s2, 4  ;;  %s273_s3 = int_to_ptr.vmem [resolvable:$true] %s272_s3 }
  0x29   :  { %309 = vmatprep.subr.mxu0 %v458_v0  ;;  %v85_v7 = vsel %vm84_vm1, %v83_v5, 0.0  ;;  %v82_v24 = vld [vmem:[#allocation7 + $0x78] sm:$0xff]  ;;  %v76_v30 = vld [vmem:[#allocation7 + $0x48] sm:$0xff]  ;;  %v75_v31 = vld [vmem:[#allocation7 + $0x40] sm:$0xff]  ;;  %s427_s11 = scalar_lea.vmem %s273_s3, 128  ;;  %p432_p2 = scmp.lt.s32.totalorder %s273_s3, %s273_s3 }
  0x2a   :  { %310 = vmatpush3.msra.mxu0 %v63_v2  ;;  %86 = vadd.xlane.f32.xlu0 %v85_v7  ;;  %v78_v28 = vld [vmem:[#allocation7 + $0x58] sm:$0xff]  ;;  %v73_v37 = vld [vmem:[#allocation7 + $0x30] sm:$0xff]  ;;  %v72_v38 = vld [vmem:[#allocation7 + $0x28] sm:$0xff]  ;;  %p428_p1 = scmp.ne.s32.totalorder %s273_s3, %s427_s11  ;;  %p433_p3 = scmp.lt.s32.totalorder %s427_s11, %s427_s11 }
  0x2b   :  { %311 = vmatprep.subr.mxu0 %v458_v0  ;;  %319 = vmatpush3.msra.mxu1 %v82_v24  ;;  %v74_v36 = vld [vmem:[#allocation7 + $0x38] sm:$0xff]  ;;  %v71_v39 = vld [vmem:[#allocation7 + $0x20] sm:$0xff]  ;;  %v69_v41 = vld [vmem:[#allocation7 + $0x10] sm:$0xff] }
  0x2c   :  { %312 = vmatpush3.msra.mxu0 %v62_v4  ;;  %320 = vmatprep.subr.mxu1 %v458_v0  ;;  %v70_v40 = vld [vmem:[#allocation7 + $0x18] sm:$0xff]  ;;  %v68_v42 = vld [vmem:[#allocation7 + $0x8] sm:$0xff]  ;;  %v67_v43 = vld [vmem:[#allocation7] sm:$0xff]  ;;  %p434_p4 = por %p433_p3, %p432_p2 }
  0x2d   :  { %313 = vmatprep.subr.mxu0 %v458_v0  ;;  %321 = vmatpush3.msra.mxu1 %v81_v25 }
  0x2e   :  { %314 = vmatpush3.msra.mxu0 %v61_v6  ;;  %322 = vmatprep.subr.mxu1 %v458_v0  ;;  %p435_p5 = pnand %p434_p4, %p428_p1 }
  0x2f   :  { %316 = vmatmul.mubr.msk.f32.vlgmr.msra.gmra.mxu0 %vm84_vm1, %v60_v3  ;;  %323 = vmatpush3.msra.mxu1 %v80_v26 }
  0x30   :  { %324 = vmatprep.subr.mxu1 %v458_v0 }
  0x31   :  { %325 = vmatpush3.msra.mxu1 %v79_v27 }
  0x32   :  { %326 = vmatprep.subr.mxu1 %v458_v0 }
  0x33   :  { %327 = vmatpush3.msra.mxu1 %v78_v28 }
  0x34   :  { %328 = vmatprep.subr.mxu1 %v458_v0 }
  0x35   :  { %329 = vmatpush3.msra.mxu1 %v77_v29 }
  0x36   :  { %330 = vmatprep.subr.mxu1 %v458_v0 }
  0x37   :  { %331 = vmatpush3.msra.mxu1 %v76_v30 }
  0x38   :  { %332 = vmatprep.subr.mxu1 %v458_v0 }
  0x39   :  { %333 = vmatpush3.msra.mxu1 %v75_v31 }
  0x3a   :  { %334 = vmatprep.subr.mxu1 %v458_v0 }
  0x3b   :  { %335 = vmatpush3.msra.mxu1 %v74_v36 }
  0x3c   :  { %336 = vmatprep.subr.mxu1 %v458_v0 }
  0x3d   :  { %337 = vmatpush3.msra.mxu1 %v73_v37 }
  0x3e   :  { %338 = vmatprep.subr.mxu1 %v458_v0 }
  0x3f   :  { %339 = vmatpush3.msra.mxu1 %v72_v38 }
  0x40   :  { %340 = vmatprep.subr.mxu1 %v458_v0 }
  0x41   :  { %341 = vmatpush3.msra.mxu1 %v71_v39 }
  0x42   :  { %342 = vmatprep.subr.mxu1 %v458_v0 }
  0x43   :  { %343 = vmatpush3.msra.mxu1 %v70_v40 }
  0x44   :  { %344 = vmatprep.subr.mxu1 %v458_v0 }
  0x45   :  { %345 = vmatpush3.msra.mxu1 %v69_v41 }
  0x46   :  { %346 = vmatprep.subr.mxu1 %v458_v0 }
  0x47   :  { %347 = vmatpush3.msra.mxu1 %v68_v42 }
  0x48   :  { %348 = vmatprep.subr.mxu1 %v458_v0 }
  0x49   :  { %349 = vmatpush3.msra.mxu1 %v67_v43 }
  0xb3   :  { %v87_v9 = vpop.xlane.xlu0 %86 }
  0xb4   :  { %v167_v10 = vadd.f32 %v283_v8, %v87_v9 }
  0xef   :  { %v157_v11 = vpop.f32.mrf.mxu0 }
  0xf0   :  { %v168_v12 = vmul.f32 2.0, %v157_v11 }
  0xf1   :  { %v317_v13 = vpop.f32.mrf.mxu0 }
  0xf2   :  { %v169_v14 = vsub.f32 %v167_v10, %v168_v12 }
  0xf4   :  { %v170_v15 = vmax.f32 %v169_v14, 0.0 }
  0xf6   :  { %361 = vrsqrt.f32 %v170_v15  ;;  %vm173_vm2 = vcmp.eq.f32.partialorder %v170_v15, inf  ;;  %v176_v18 = vand.u32 2147483648, %v170_v15  ;;  %vm175_vm3 = vcmp.eq.f32.partialorder %v170_v15, 0.0 }
 0x103   :  { %v362_v16 = vpop.eup %361 }
 0x104   :  { %v172_v17 = vmul.f32 %v362_v16, %v170_v15 }
 0x106   :  { %v174_v19 = vsel %vm173_vm2, %v170_v15, %v172_v17 }
 0x107   :  { %v177_v21 = vsel %vm175_vm3, %v176_v18, %v174_v19 }
 0x108   :  { %v178_v22 = vmul.f32 -0.01, %v177_v21 }
 0x10a   :  { %v185_v23 = vadd.f32 %v284_v20, %v178_v22 }
 0x10c   :  { %186 = vmax.xlane.f32.xlu0 %v185_v23 }
 0x195   :  { %v187_v32 = vpop.xlane.xlu0 %186 }
 0x196   :  { %v188_v33 = vsub.f32 %v185_v23, %v187_v32 }
 0x198   :  { %v189_v34 = vmul.f32 1.442695, %v188_v33 }
 0x19a   :  { %363 = vpow2.f32 %v189_v34 }
 0x1a7   :  { %v364_v35 = vpop.eup %363 }
 0x1a8   :  { %191 = vadd.xlane.f32.xlu1 %v364_v35 }
 0x231   :  { %v192_v44 = vpop.xlane.xlu1 %191 }
 0x232   :  { %365 = vrcp.f32 %v192_v44 }
 0x23f   :  { %v366_v45 = vpop.eup %365 }
 0x240   :  { %v194_v46 = vmul.f32 %v366_v45, %v364_v35 }
 0x242   :  { %351 = vmatmul.mubr.f32.vlgmr.msra.gmra.mxu1 %v194_v46 }
 0x302   :  { %v261_v47 = vpop.f32.mrf.mxu1 }
 0x303   :  { %265 = vst [vmem:[#allocation8] sm:$0xff] %v261_v47 }
 0x304   :  { %v352_v48 = vpop.f32.mrf.mxu1 }
 0x305   :  { %438 = shalt.err (!%p435_p5)
}
 0x306   :  { %275 = dma.vmem_to_hbm [thread:$0]  %s273_s3, 128, %s536_s5, [#allocation4]  }
 0x307   :  { %451 = dma.done.wait [#allocation4], 128  }
 0x308   :  { %452 = vsyncadd [#allocation4], 4294967168 }
 0x309   :  { %279 = vsyncpa [#allocation3], 1 }
 0x30a   :  { %280 = vsyncpa [#allocation6], 1 }
 0x30b   :  { %281 = vsyncpa [#allocation4], 1 }

</bundles_post_ra>
